<compile_context>
chip_gen: v7x
topology: tpu7x:2x2x1
jax: 0.10.0
libtpu: 0.0.40
codegen_flags: <defaults>
</compile_context>

<pallas_src>
import functools

import jax
import jax.numpy as jnp
from jax import lax
from jax.experimental import pallas as pl
from jax.experimental.pallas import tpu as pltpu


# ---------------------------------------------------------------------------
# Kernels
# ---------------------------------------------------------------------------

def memba_t_kernel(x_t_ref, m_t_ref, b_ref, y_t_ref):
    """Y^T tile = M^T @ X^T tile + b.   (O, cols) = (O, D) @ (D, cols)."""
    y_t_ref[...] = (
        jnp.dot(m_t_ref[...], x_t_ref[...], preferred_element_type=jnp.float32)
        + b_ref[...]
    )


def memba_onehot_kernel(lft_ref, rgt_ref, m_t_ref, b_ref, y_t_ref, *, n_item, dim_inp):
    """Same as memba_t_kernel, but X^T is built in-register from (left, right) indices.

    X^T[d, n] = 1 if (d < n_item and d == left[n]) or (d >= n_item and d-n_item == right[n]).
    """
    cols = lft_ref.shape[1]
    d = lax.broadcasted_iota(jnp.int32, (dim_inp, cols), 0)
    lft = lft_ref[...]                      # (1, cols) int32, broadcasts over rows
    rgt = rgt_ref[...]
    onehot = jnp.where(d < n_item, d == lft, (d - n_item) == rgt)
    x_t = onehot.astype(jnp.bfloat16)
    y_t_ref[...] = (
        jnp.dot(m_t_ref[...], x_t, preferred_element_type=jnp.float32)
        + b_ref[...]
    )


# ---------------------------------------------------------------------------
# Wrappers
# ---------------------------------------------------------------------------

def fuse_weights(w_sr, w_ff, b_ff):
    """One-time algebraic fusion (call once per weight update, NOT per forward).

    Returns M^T (O, D) f32 and b_col (O, 1) f32 with  Y^T = M^T @ X^T + b_col.
    """
    D = w_sr.shape[0]
    O = w_ff.shape[0]
    m_t = w_ff.astype(jnp.float32) @ (
        2.0 * jnp.eye(D, dtype=jnp.float32) + w_sr.astype(jnp.float32)
    )                                                   # (O, D)
    b_col = jnp.reshape(b_ff, (O, 1)).astype(jnp.float32)
    return m_t, b_col


def memba_forward(x, m_t, b_col):
    """Single Memba.forward call: Y_hat = FF(Rx)[0], shape (O,).

    Only row 0 of FF(Rx) is consumed. At (1x16)@(16x8) the work is ~256 FLOPs, so per
    the perf review this path deliberately does NOT use Pallas: a pallas_call launch
    would be 100% overhead. Plain jnp lets XLA fuse it.
    """
    return m_t @ x[0].astype(jnp.float32) + b_col[:, 0]


def _pad_cols(a, n_pad):
    n = a.shape[-1]
    if n_pad == n:
        return a
    return jnp.pad(a, ((0, 0), (0, n_pad - n)))


def memba_forward_many(x_many, m_t, b_col, *, block_cols=2048):
    """Batched path: N independent Memba queries (one row each) in one launch.

    x_many: (N, D)  ->  (N, O).
    Internally transposed so N rides the 128-wide lane axis (lane-dense stores,
    full-lane MXU). Inputs stream as bf16; accumulation and output are f32.
    """
    assert block_cols % 128 == 0, "block_cols must be a multiple of 128"
    N, D = x_many.shape
    O = m_t.shape[0]
    n_pad = ((N + block_cols - 1) // block_cols) * block_cols

    # Layout plumbing in the wrapper (per review): present a lane-dense (D, N) slab.
    x_t = _pad_cols(x_many.T.astype(jnp.bfloat16), n_pad)          # (D, n_pad) bf16

    y_t = pl.pallas_call(
        memba_t_kernel,
        out_shape=jax.ShapeDtypeStruct((O, n_pad), jnp.float32),
        grid_spec=pltpu.PrefetchScalarGridSpec(
            num_scalar_prefetch=0,
            grid=(n_pad // block_cols,),
            in_specs=[
                pl.BlockSpec((D, block_cols), lambda i: (0, i)),    # X^T tile (streams)
                pl.BlockSpec((O, D), lambda i: (0, 0)),             # M^T (resident)
                pl.BlockSpec((O, 1), lambda i: (0, 0)),             # bias (resident)
            ],
            out_specs=pl.BlockSpec((O, block_cols), lambda i: (0, i)),
        ),
        compiler_params=pltpu.CompilerParams(
            dimension_semantics=("parallel",)),
    )(x_t, m_t.astype(jnp.bfloat16), b_col)
    return y_t[:, :N].T                                             # (N, O)


def memba_forward_onehot(left_idx, right_idx, m_t, b_col, *, n_item, block_cols=2048):
    """Batched path for concat-of-two-one-hot inputs (as in the driver script).

    left_idx, right_idx: (N,) int32  ->  (N, O).
    Streams only 8 B/row of indices from HBM instead of the dense 64 B/row X.
    """
    assert block_cols % 128 == 0, "block_cols must be a multiple of 128"
    N = left_idx.shape[0]
    O, D = m_t.shape
    n_pad = ((N + block_cols - 1) // block_cols) * block_cols

    lft = _pad_cols(left_idx.astype(jnp.int32).reshape(1, N), n_pad)
    rgt = _pad_cols(right_idx.astype(jnp.int32).reshape(1, N), n_pad)

    kernel = functools.partial(memba_onehot_kernel, n_item=n_item, dim_inp=D)
    y_t = pl.pallas_call(
        kernel,
        out_shape=jax.ShapeDtypeStruct((O, n_pad), jnp.float32),
        grid_spec=pltpu.PrefetchScalarGridSpec(
            num_scalar_prefetch=0,
            grid=(n_pad // block_cols,),
            in_specs=[
                pl.BlockSpec((1, block_cols), lambda i: (0, i)),     # left indices
                pl.BlockSpec((1, block_cols), lambda i: (0, i)),     # right indices
                pl.BlockSpec((O, D), lambda i: (0, 0)),              # M^T (resident)
                pl.BlockSpec((O, 1), lambda i: (0, 0)),              # bias (resident)
            ],
            out_specs=pl.BlockSpec((O, block_cols), lambda i: (0, i)),
        ),
        compiler_params=pltpu.CompilerParams(
            dimension_semantics=("parallel",)),
    )(lft, rgt, m_t.astype(jnp.bfloat16), b_col)
    return y_t[:, :N].T                                              # (N, O)


def memba_reference(x, w_sr, w_ff, b_ff):
    rx = 2.0 * x + x @ w_sr.T
    return rx @ w_ff.T + b_ff.reshape(1, -1)


# ---------------------------------------------------------------------------
# Driver
# ---------------------------------------------------------------------------

if __name__ == "__main__":
    n_item = 8
    dim_inp = 2 * n_item      # 16: hstack of two one-hot codes, as in the driver script
    batch = 8                 # rows of X in one Memba.forward call
    n_out = 8                 # output head width

    key = jax.random.PRNGKey(0)
    k1, k2, k3, k4, k5, k6 = jax.random.split(key, 6)

    # ShapeRotator.W is (dim_inp, dim_inp); zeros at __init__, here given small
    # deterministic values so the fused matmul does real work.
    w_sr = 0.05 * jax.random.normal(k3, (dim_inp, dim_inp), jnp.float32)
    # FF = output head modeled as Linear(dim_inp, n_out)
    w_ff = 0.1 * jax.random.normal(k4, (n_out, dim_inp), jnp.float32)
    b_ff = 0.01 * jnp.arange(n_out, dtype=jnp.float32)

    # One-time weight fusion (hoisted out of the forward paths, per review).
    m_t, b_col = fuse_weights(w_sr, w_ff, b_ff)

    # --- single Memba.forward call (matches the PyTorch module: FF(Rx)[0]) ---
    left = jax.random.randint(k1, (batch,), 0, n_item)
    right = jax.random.randint(k2, (batch,), 0, n_item)
    x = jnp.concatenate(
        [jax.nn.one_hot(left, n_item), jax.nn.one_hot(right, n_item)], axis=-1
    ).astype(jnp.float32)                                            # (8, 16)
    y_hat = memba_forward(x, m_t, b_col)
    jax.block_until_ready(y_hat)
    y_ref_single = memba_reference(x, w_sr, w_ff, b_ff)[0]
    assert y_hat.shape == (n_out,)
    assert jnp.allclose(y_hat, y_ref_single, atol=1e-5, rtol=1e-5)

    # --- batched Pallas path: many independent Memba queries in one launch ---
    # Ragged N on purpose to exercise the padded-tail handling.
    N = 1000
    l2 = jax.random.randint(k5, (N,), 0, n_item)
    r2 = jax.random.randint(k6, (N,), 0, n_item)
    x_many = jnp.concatenate(
        [jax.nn.one_hot(l2, n_item), jax.nn.one_hot(r2, n_item)], axis=-1
    ).astype(jnp.float32)                                            # (1000, 16)
    y_many_ref = memba_reference(x_many, w_sr, w_ff, b_ff)           # f32 reference

    # Dense streaming kernel (small block_cols here to keep the example tiny while
    # still exercising a multi-step grid; production default is 2048).
    y_many = memba_forward_many(x_many, m_t, b_col, block_cols=256)
    jax.block_until_ready(y_many)
    assert y_many.shape == (N, n_out)
    assert jnp.allclose(y_many, y_many_ref, atol=1e-2, rtol=1e-2)    # bf16 inputs

    # Index (one-hot-free) kernel.
    y_idx = memba_forward_onehot(l2, r2, m_t, b_col, n_item=n_item, block_cols=256)
    jax.block_until_ready(y_idx)
    assert y_idx.shape == (N, n_out)
    assert jnp.allclose(y_idx, y_many_ref, atol=1e-2, rtol=1e-2)     # bf16 weights

    print("KERNEL_OK")
</pallas_src>

<mosaic_0001>
module attributes {stable_mosaic.version = 11 : i64} {
  func.func @memba_t_kernel(%arg0: i32, %arg1: memref<16x256xbf16, #tpu.memory_space<vmem>>, %arg2: memref<8x16xbf16, #tpu.memory_space<vmem>>, %arg3: memref<8x1xf32, #tpu.memory_space<vmem>>, %arg4: memref<8x256xf32, #tpu.memory_space<vmem>>) attributes {dimension_semantics = [#tpu.dimension_semantics<parallel>], iteration_bounds = array<i64: 4>, scalar_prefetch = 0 : i64, scratch_operands = 0 : i64, tpu.core_type = #tpu.core_type<tc>, window_params = [{transform_indices = @transform_0, window_bounds = array<i64: 16, 256>}, {pipeline_mode = #tpu.pipeline_mode<synchronous>, transform_indices = @transform_1, window_bounds = array<i64: 8, 16>}, {pipeline_mode = #tpu.pipeline_mode<synchronous>, transform_indices = @transform_2, window_bounds = array<i64: 8, 1>}, {transform_indices = @transform_3, window_bounds = array<i64: 8, 256>}]} {
    %c0 = arith.constant 0 : index
    %c0_0 = arith.constant 0 : index
    %0 = vector.load %arg2[%c0, %c0_0] : memref<8x16xbf16, #tpu.memory_space<vmem>>, vector<8x16xbf16>
    %c0_1 = arith.constant 0 : index
    %c0_2 = arith.constant 0 : index
    %1 = vector.load %arg1[%c0_1, %c0_2] : memref<16x256xbf16, #tpu.memory_space<vmem>>, vector<16x256xbf16>
    %cst = arith.constant dense<0.000000e+00> : vector<8x256xf32>
    %2 = tpu.matmul %0, %1, %cst {dimension_numbers = #tpu.dot_dimension_numbers<[1], [0], [0], [1], [0, 0, 1, 1], [], []>} : vector<8x16xbf16>, vector<16x256xbf16>, vector<8x256xf32> -> vector<8x256xf32>
    %c0_3 = arith.constant 0 : index
    %c0_4 = arith.constant 0 : index
    %3 = vector.load %arg3[%c0_3, %c0_4] : memref<8x1xf32, #tpu.memory_space<vmem>>, vector<8x1xf32>
    %4 = vector.broadcast %3 : vector<8x1xf32> to vector<8x256xf32>
    %5 = arith.addf %2, %4 : vector<8x256xf32>
    %c0_5 = arith.constant 0 : index
    %c0_6 = arith.constant 0 : index
    %6 = vector.load %arg4[%c0_5, %c0_6] : memref<8x256xf32, #tpu.memory_space<vmem>>, vector<8x256xf32>
    tpu.vector_store %arg4[%c0_5, %c0_6], %5 {strides = array<i32>} : memref<8x256xf32, #tpu.memory_space<vmem>>, vector<8x256xf32>,
    return
  }
  func.func @transform_0(%arg0: i32) -> (i32, i32) {
    %c0_i32 = arith.constant 0 : i32
    %c0_i32_0 = arith.constant 0 : i32
    return %c0_i32, %arg0 : i32, i32
  }
  func.func @transform_1(%arg0: i32) -> (i32, i32) {
    %c0_i32 = arith.constant 0 : i32
    %c0_i32_0 = arith.constant 0 : i32
    %c0_i32_1 = arith.constant 0 : i32
    return %c0_i32, %c0_i32_0 : i32, i32
  }
  func.func @transform_2(%arg0: i32) -> (i32, i32) {
    %c0_i32 = arith.constant 0 : i32
    %c0_i32_0 = arith.constant 0 : i32
    %c0_i32_1 = arith.constant 0 : i32
    return %c0_i32, %c0_i32_0 : i32, i32
  }
  func.func @transform_3(%arg0: i32) -> (i32, i32) {
    %c0_i32 = arith.constant 0 : i32
    %c0_i32_0 = arith.constant 0 : i32
    return %c0_i32, %arg0 : i32, i32
  }
}

</mosaic_0001>

<bundles_post_ra>
// kernel: tpu_custom_call.1
= control target key start
LH: loop header
LB: loop body
LE: loop exit
PB: predicated region body
PF: predicated region fallthrough
CT: control target
= control target key end

     0   :  { %8 = vsyncpa [#allocation3], 0  ;;  %s706_s0 = inlined_call_operand.hbm [shape: bf16[16,1024], index: 0, kind: input, shape index: {}]   ;;  %s707_s1 = inlined_call_operand.vmem [shape: bf16[8,16], index: 1, kind: input, shape index: {}]   ;;  %s708_s2 = inlined_call_operand.vmem [shape: f32[8,1], index: 2, kind: input, shape index: {}]   ;;  %s709_s3 = inlined_call_operand.hbm [shape: f32[8,1024], index: 3, kind: output, shape index: {}]  }
   0x1   :  { %10 = vsyncpa [#allocation3 + $0x1], 0 }
   0x2   :  { %11 = vsyncpa [#allocation4], 0 }
   0x3   :  { %13 = vsyncpa [#allocation4 + $0x1], 0  ;;  %s540_s12 = smov 0   ;;  %s542_s13 = smov 0  }
   0x4   :  { %s544_s14 = smov 0   ;;  %s546_s15 = smov 0  }
   0x5 LB: > { %s561_s16 = sadd.s32 4294967295, %s512_s15   ;;  %s343_s17 = sadd.s32 4294967294, %s512_s15   ;;  %s512_s15 = sphi %s546_s15, %s722_s15   ;;  %s508_s14 = sphi %s544_s14, %s721_s14   ;;  %s504_s13 = sphi %s542_s13, %s720_s13   ;;  %s500_s12 = sphi %s540_s12, %s719_s12  }
   0x6   : > { %s565_s18 = sadd.s32 1, %s512_s15   ;;  %s26_s19 = sadd.s32 1, %s508_s14 }
   0x7   : > { %s23_s20 = ssub.s32 %s512_s15, %s565_s18  ;;  %p33_p0 = scmp.ne.s32.totalorder %s508_s14, %s504_s13 }
   0x8   : > { %p24_p1 = scmp.eq.s32.totalorder %s23_s20, 0  ;;  %p34_p2 = scmp.eq.s32.totalorder %s512_s15, 0 }
   0x9   : > { %p39_p3 = scmp.ne.s32.totalorder %s504_s13, %s500_s12  ;;  %p40_p4 = scmp.eq.s32.totalorder %s561_s16, 0 }
   0xa   : > { %s577_s21 = scalar_select %p24_p1, %s508_s14, %s26_s19  }
   0xb   : > { %p579_p5 = por %p34_p2, %p33_p0  ;;  %p583_p6 = por %p40_p4, %p39_p3 }
   0xc   : > { %p105_p7 = scmp.eq.s32.totalorder %s561_s16, 3  ;;  %p111_p8 = scmp.eq.s32.totalorder %s343_s17, 3 }
   0xd   : > { %p374_p9 = scmp.lt.s32.totalorder %s512_s15, 4  ;;  %s137_s26 = sand.u32 1, %s508_s14  }
   0xe   : > { %p589_p10 = por %p105_p7, %p33_p0  ;;  %p593_p11 = por %p111_p8, %p39_p3 }
   0xf   : > { %s360_s27 = sshll.u32 %s512_s15, 7  ;;  %s346_s28 = sshll.u32 %s137_s26, 4 }
  0x10   : > { %s713_s24 = scalar_select %p589_p10, 1, 0 }
  0x11   : > { %s714_s25 = scalar_select %p593_p11, 1, 0 }
  0x12   : > { %s602_s4 = scalar_lea.hbm %s706_s0, %s360_s27  ;;  %s141_s5 = scalar_lea.vmem [#allocation2], %s346_s28 }
  0x13   : > { %s148_s6 = sshll.u32 %s141_s5, 4  ;;  %p606_p12 = pnand %p374_p9, %p579_p5  ;;  %s610_s6 = int_to_ptr.vmem [resolvable:$true] %s148_s6 }
  0x14   : > { %s613_s8 = scalar_lea.sflag [#allocation3], %s137_s26  ;;  %s416_s9 = scalar_lea.hbm %s602_s4, 256 }
  0x15   : > { %p417_p0 = scmp.ne.s32.totalorder %s602_s4, %s416_s9  ;;  %p418_p1 = pneg %p606_p12 }
  0x16   : > { %s421_s17 = scalar_lea.hbm %s706_s0, 1024  ;;  %p422_p4 = scmp.lt.u32.totalorder %s602_s4, %s706_s0 }
  0x17   : > { %p419_p2 = pnand %p418_p1, %p417_p0  ;;  %p423_p5 = scmp.lt.u32.totalorder %s421_s17, %s416_s9 }
  0x18   : > { %p425_p8 = scmp.lt.u32.totalorder %s416_s9, %s602_s4 }
  0x19   : > { %p420_p3 = pneg %p419_p2  ;;  %p424_p7 = por %p423_p5, %p422_p4 }
  0x1b   : > { %p426_p9 = por %p425_p8, %p424_p7 }
  0x1d   : > { %p427_p13 = pnand %p426_p9, %p420_p3 }
  0x1f   : > { %430 = shalt.err (!%p427_p13)
}
  0x20   : > { %s431_s22 = scalar_lea.vmem %s610_s6, 256  ;;  %s514_s26 = smov [#allocation2]  }
  0x21   : > { %p432_p0 = scmp.ne.s32.totalorder %s610_s6, %s431_s22  ;;  %s436_s27 = sshll.u32 %s514_s26, 4  ;;  %s437_s27 = int_to_ptr.vmem [resolvable:$false] %s436_s27 }
  0x22   : > { %s438_s28 = scalar_lea.vmem %s437_s27, 512  ;;  %p439_p10 = scmp.lt.s32.totalorder %s610_s6, %s437_s27 }
  0x23   : > { %p434_p2 = pnand %p432_p0, %p418_p1  ;;  %p440_p4 = scmp.lt.s32.totalorder %s438_s28, %s431_s22 }
  0x25   : > { %p435_p11 = pneg %p434_p2  ;;  %p441_p5 = por %p440_p4, %p439_p10 }
  0x27   : > { %p442_p7 = pnand %p441_p5, %p435_p11 }
  0x29   : > { %445 = shalt.err (!%p442_p7)
}
  0x2a   : > { %s515_s29 = smov 512   ;;  %s516_s30 = smov 128  }
  0x2b   : > { %s517_s5 = smov 8   ;;  %p156_p13 = scmp.lt.s32.totalorder %s512_s15, 5 }
  0x2c   : > { %369 = dma.hbm_to_vmem [thread:$0]  (!%p606_p12), %s602_s4, 256, %s610_s6, %s613_s8, %s515_s29, %s516_s30, %s517_s5  }
  0x2d   : > { %p716_p1 = scmp.ge.s32.totalorder %s512_s15, 1 }
  0x2f   : > { %p157_p3 = pnand %p716_p1, %p156_p13 }
  0x30   : > { %s645_s9 = sand.u32 (!%p157_p3), 1, %s504_s13  }
  0x31   : > { %160 = sbr.rel (%p157_p3) target bundleno = 292 (0x124), region = 32  ;;  %s350_s10 = sshll.u32 (!%p157_p3), %s645_s9, 4 }
  0x32   : > { %s163_s11 = scalar_lea.sflag (!%p157_p3), [#allocation3], %s645_s9  ;;  %s166_s17 = scalar_lea.vmem (!%p157_p3), [#allocation2], %s350_s10 }
  0x38   : > { %491 = dma.done.wait (%p583_p6), %s163_s11, 256  }
  0x39   : > { %493 = vsyncadd (%p583_p6), %s163_s11, 4294967040  ;;  %v518_v0 = vmov 0   ;;  %v413_v1 = vld [vmem:[%s166_s17 + $0x4] ss:$8 sps:$4 sm:$0xff]   ;;  %v415_v2 = vld [vmem:[%s166_s17] ss:$8 sps:$4 sm:$0xff]  }
  0x3a   : > { %247 = vmatprep.mubr.bf16.mxu0 %v518_v0  ;;  %412 = vset.pattern.permute.xlu0 %v518_v0  ;;  %v195_v3 = vld [vmem:[%s708_s2] sm:$0xff]  ;;  %vm211_vm0 = vcmask 130048   ;;  %s361_s23 = sshll.u32 %s561_s16, 8  ;;  %s188_s19 = scalar_lea.vmem [#allocation5], %s350_s10 }
  0x3b   : > { %215 = vmatprep.subr.bf16.mxu0 %v413_v1  ;;  %198 = vperm.xlu0 %412, %v195_v3   ;;  %v192_v4 = vld [vmem:[%s707_s1] sm:$0xf]  ;;  %s273_s20 = sshll.u32 %s188_s19, 4  ;;  %s663_s27 = scalar_lea.hbm %s709_s3, %s361_s23  ;;  %s665_s20 = int_to_ptr.vmem [resolvable:$true] %s273_s20 }
  0x3c   : > { %216 = vmatpush1.bf16.msra.mxu0 %v415_v2  ;;  %s259_s16 = scalar_lea.sflag [#allocation4], %s645_s9  ;;  %s446_s28 = scalar_lea.vmem %s665_s20, 256 }
  0x3d   : > { %p447_p6 = scmp.ne.s32.totalorder %s665_s20, %s446_s28  ;;  %p717_p10 = scmp.ne.s32.totalorder %s713_s24, 0 }
  0x3e   : > { %s519_s29 = smov [#allocation5]  }
  0x3f   : > { %354 = vmatmul.mubr.msk.bf16.vlgmr.msra.gmra.mrb[0].mxu0 %vm211_vm0, %v192_v4  ;;  %p448_p11 = pnand %p447_p6, %p717_p10  ;;  %s450_s30 = sshll.u32 %s519_s29, 4  ;;  %s451_s30 = int_to_ptr.vmem [resolvable:$false] %s450_s30 }
  0x40   : > { %s452_s5 = scalar_lea.vmem %s451_s30, 512  ;;  %p453_p8 = scmp.lt.s32.totalorder %s665_s20, %s451_s30 }
  0x41   : > { %p449_p12 = pneg %p448_p11  ;;  %p454_p9 = scmp.lt.s32.totalorder %s452_s5, %s446_s28 }
  0x43   : > { %p455_p0 = por %p454_p9, %p453_p8 }
  0x45   : > { %p456_p2 = pnand %p455_p0, %p449_p12 }
  0xba   : > { %v199_v5 = vpop.permute.xlu0 %198 }
 0x112   : > { %v249_v6 = vpop.f32.mrb[0].mxu0 }
 0x113   : > { %v250_v7 = vadd.f32 %v249_v6, %v199_v5  ;;  %v251_v8 = vpop.f32.mrb[1].mxu0 }
 0x114   : > { %v252_v9 = vadd.f32 %v251_v8, %v199_v5  ;;  %v253_v10 = vpop.f32.mrb[2].mxu0 }
 0x115   : > { %256 = vst [vmem:[%s188_s19] sm:$0xff] %v250_v7  ;;  %v254_v11 = vpop.f32.mrb[3].mxu0 }
 0x116   : > { %257 = vst [vmem:[%s188_s19 + $0x8] sm:$0xff] %v252_v9 }
 0x117   : > { %459 = shalt.err (!%p456_p2)
}
 0x118   : > { %s460_s9 = scalar_lea.hbm %s663_s27, 256  ;;  %s464_s17 = scalar_lea.hbm %s709_s3, 1024 }
 0x119   : > { %p461_p4 = scmp.ne.s32.totalorder %s663_s27, %s460_s9  ;;  %p465_p13 = scmp.lt.u32.totalorder %s663_s27, %s709_s3 }
 0x11a   : > { %p466_p1 = scmp.lt.u32.totalorder %s464_s17, %s460_s9  ;;  %p468_p6 = scmp.lt.u32.totalorder %s460_s9, %s663_s27 }
 0x11b   : > { %p462_p5 = pnand %p461_p4, %p717_p10 }
 0x11c   : > { %p467_p3 = por %p466_p1, %p465_p13 }
 0x11d   : > { %p463_p7 = pneg %p462_p5 }
 0x11e   : > { %p469_p11 = por %p468_p6, %p467_p3 }
 0x120   : > { %p470_p12 = pnand %p469_p11, %p463_p7 }
 0x122   : > { %473 = shalt.err (!%p470_p12)
}
 0x123   : > { %364 = dma.vmem_to_hbm [thread:$0]  (%p717_p10), %s665_s20, 256, %s663_s27, %s259_s16  }
 0x124 PF: > { %p375_p8 = scmp.ge.s32.totalorder %s512_s15, 2  ;;  %s285_s7 = sand.u32 1, %s500_s12  }
 0x125   : > { %p718_p9 = scmp.ne.s32.totalorder %s714_s25, 0  ;;  %s286_s8 = scalar_lea.sflag [#allocation4], %s285_s7 }
 0x127   : > { %p371_p0 = pnand %p375_p8, %p718_p9 }
 0x129   : > { %495 = dma.done.wait (!%p371_p0), %s286_s8, 256  }
 0x12a   : > { %497 = vsyncadd (!%p371_p0), %s286_s8, 4294967040  ;;  %p16_p2 = scmp.ge.s32.totalorder %s565_s18, 6   ;;  %s719_s12 = smov %s504_s13 }
 0x12b   : > { %s720_s13 = smov %s508_s14  ;;  %s721_s14 = smov %s577_s21 }
 0x12c   : > { %s722_s15 = smov %s565_s18  ;;  %18 = sbr.rel (!%p16_p2) target bundleno = 5 (0x5), region = 77 }
 0x133   :  { %291 = vsyncpa [#allocation3], 1 }
 0x134   :  { %293 = vsyncpa [#allocation3 + $0x1], 1 }
 0x135   :  { %294 = vsyncpa [#allocation4], 1 }
 0x136   :  { %296 = vsyncpa [#allocation4 + $0x1], 1 }

</bundles_post_ra>
